<compile_context>
chip_gen: v5e
topology: v5e:2x2
jax: 0.10.0
libtpu: 0.0.40
codegen_flags: <defaults>
</compile_context>

<pallas_src>
import functools

import jax
import jax.numpy as jnp
from jax.experimental import pallas as pl
from jax.experimental.pallas import tpu as pltpu


# ---------------------------------------------------------------------------
# helpers
# ---------------------------------------------------------------------------
_FULLHW_SLAB_LIMIT = 2 * 1024 * 1024   # f32-equivalent per-batch slab for Path A
_VMEM_LIMIT_BYTES = 32 * 1024 * 1024   # safe on v5e/v6e (128 MiB phys) and v7x (64 MiB)


def _ceil_to(x, m):
    return (x + m - 1) // m * m


def _choose_tile_hw(hw, c, in_itemsize, out_itemsize,
                    budget_bytes=16 * 1024 * 1024, cap=1024):
    """Largest 128-multiple lane tile (<= cap) whose VMEM footprint fits budget.

    Footprint ~= double-buffered input tile + double-buffered output tile
    + ~4 f32 elementwise temporaries of the same tile shape.
    """
    t = min(cap, _ceil_to(hw, 128))
    t = max(128, (t // 128) * 128)

    def footprint(tt):
        return c * tt * (2 * in_itemsize + 2 * out_itemsize + 4 * 4)

    while t > 128 and footprint(t) > budget_bytes:
        t -= 128
    return t


def _channel_excitation(gap, w1_ref, b1_ref, w2_ref, b2_ref):
    """Tiny FCs on the VPU: gap (1,C,1) -> chn (1,C,1). No MXU, no transposes."""
    # h[j] = relu(sum_c gap[c] * w1_t[c, j] + b1[j])            -> (1, 1, hidden)
    h = jnp.maximum(
        jnp.sum(gap * w1_ref[...], axis=1, keepdims=True) + b1_ref[...], 0.0)
    # chn[c] = sigmoid(sum_j h[j] * w2[c, j] + b2[c])           -> (1, C, 1)
    return jax.nn.sigmoid(
        jnp.sum(h * w2_ref[...], axis=2, keepdims=True) + b2_ref[...])


# ---------------------------------------------------------------------------
# Path A: per-batch slab fits comfortably in VMEM — single-pass kernel.
#   grid = (B,); x read once, out written once.
# ---------------------------------------------------------------------------
def _scse_fullhw_kernel(x_ref, w1_ref, b1_ref, w2_ref, b2_ref, ws_ref, o_ref,
                        *, inv_hw, ordinary):
    x = x_ref[...].astype(jnp.float32)                               # (1, C, HW)
    gap = jnp.sum(x, axis=2, keepdims=True) * inv_hw                 # (1, C, 1)
    chn = _channel_excitation(gap, w1_ref, b1_ref, w2_ref, b2_ref)   # (1, C, 1)
    # fused 1x1 spatial-squeeze conv (Cout=1) as a sublane reduction over C
    spa = jax.nn.sigmoid(jnp.sum(x * ws_ref[...], axis=1, keepdims=True))  # (1,1,HW)
    if ordinary:
        out = x * (chn + spa)            # = x*chn + x*spa
    else:
        out = x * (x * chn) * (x * spa)
    o_ref[...] = out.astype(o_ref.dtype)


def scse_fullhw_pallas(x3, pk, ordinary):
    B, C, HW = x3.shape
    hidden = pk["w1k"].shape[2]
    itemsize = x3.dtype.itemsize
    cost = pl.CostEstimate(
        flops=int(6 * B * C * HW),
        transcendentals=int(B * (HW + C)),
        bytes_accessed=int(B * C * HW * 2 * itemsize),
    )
    return pl.pallas_call(
        functools.partial(_scse_fullhw_kernel,
                          inv_hw=1.0 / float(HW), ordinary=ordinary),
        out_shape=jax.ShapeDtypeStruct((B, C, HW), x3.dtype),
        grid_spec=pltpu.PrefetchScalarGridSpec(
            num_scalar_prefetch=0,
            grid=(B,),
            in_specs=[
                pl.BlockSpec((1, C, HW), lambda b: (b, 0, 0)),       # x slab
                pl.BlockSpec((1, C, hidden), lambda b: (0, 0, 0)),   # w1_t
                pl.BlockSpec((1, 1, hidden), lambda b: (0, 0, 0)),   # b1
                pl.BlockSpec((1, C, hidden), lambda b: (0, 0, 0)),   # w2
                pl.BlockSpec((1, C, 1), lambda b: (0, 0, 0)),        # b2
                pl.BlockSpec((1, C, 1), lambda b: (0, 0, 0)),        # spatial-SE w
            ],
            out_specs=pl.BlockSpec((1, C, HW), lambda b: (b, 0, 0)),
        ),
        compiler_params=pltpu.CompilerParams(
            # b is "parallel": v7x megacore gets both cores work when B >= 2.
            dimension_semantics=("parallel",),
            vmem_limit_bytes=_VMEM_LIMIT_BYTES,
        ),
        cost_estimate=cost,
    )(x3, pk["w1k"], pk["b1k"], pk["w2k"], pk["b2k"], pk["wsk"])


# ---------------------------------------------------------------------------
# Path B: large HW — fused two-phase tiled kernel, grid = (B, 2, nT).
#   phase 0: masked GAP accumulation (+ FCs at the last tile, into scratch)
#   phase 1: gate (spatial-SE conv fused as sublane reduction) + write out
#   Output index_map maps all of phase 0 to block (b,0,0), which phase 1
#   rewrites first, so every output block is written exactly once with valid
#   data and no wrapper pad/slice is needed.
# ---------------------------------------------------------------------------
def _scse_tiled_kernel(x_ref, w1_ref, b1_ref, w2_ref, b2_ref, ws_ref, o_ref,
                       gap_sc, chn_sc, *, hw, inv_hw, tile, ordinary):
    p = pl.program_id(1)
    j = pl.program_id(2)
    nj = pl.num_programs(2)

    @pl.when((p == 0) & (j == 0))
    def _init():
        gap_sc[...] = jnp.zeros_like(gap_sc)

    @pl.when(p == 0)
    def _gap_phase():
        x = x_ref[...].astype(jnp.float32)                           # (1, C, T)
        # mask the (possibly) partial tail tile: OOB lanes hold garbage
        lane = jax.lax.broadcasted_iota(jnp.int32, x.shape, 2)
        valid = (lane + j * tile) < hw
        gap_sc[...] += jnp.sum(jnp.where(valid, x, 0.0), axis=2, keepdims=True)

    @pl.when((p == 0) & (j == nj - 1))
    def _fc_phase():
        gap = gap_sc[...] * inv_hw
        chn_sc[...] = _channel_excitation(gap, w1_ref, b1_ref, w2_ref, b2_ref)

    @pl.when(p == 1)
    def _gate_phase():
        x = x_ref[...].astype(jnp.float32)                           # (1, C, T)
        chn = chn_sc[...]                                            # (1, C, 1)
        # no mask needed: garbage pad lanes only produce garbage pad lanes,
        # which Pallas drops on writeback of the partial output block.
        spa = jax.nn.sigmoid(jnp.sum(x * ws_ref[...], axis=1, keepdims=True))
        if ordinary:
            out = x * (chn + spa)
        else:
            out = x * (x * chn) * (x * spa)
        o_ref[...] = out.astype(o_ref.dtype)


def scse_tiled_pallas(x3, pk, ordinary, max_tile_hw=None):
    B, C, HW = x3.shape
    hidden = pk["w1k"].shape[2]
    itemsize = x3.dtype.itemsize

    T = _choose_tile_hw(HW, C, itemsize, itemsize)
    if max_tile_hw is not None:
        T = min(T, max(128, (max_tile_hw // 128) * 128))
    nT = pl.cdiv(HW, T)

    cost = pl.CostEstimate(
        flops=int(6 * B * C * HW),
        transcendentals=int(B * (HW + C)),
        bytes_accessed=int(B * C * HW * 3 * itemsize),
    )
    return pl.pallas_call(
        functools.partial(_scse_tiled_kernel, hw=HW, inv_hw=1.0 / float(HW),
                          tile=T, ordinary=ordinary),
        out_shape=jax.ShapeDtypeStruct((B, C, HW), x3.dtype),
        grid_spec=pltpu.PrefetchScalarGridSpec(
            num_scalar_prefetch=0,
            grid=(B, 2, nT),
            in_specs=[
                pl.BlockSpec((1, C, T), lambda b, p, j: (b, 0, j)),        # x tile
                pl.BlockSpec((1, C, hidden), lambda b, p, j: (0, 0, 0)),   # w1_t
                pl.BlockSpec((1, 1, hidden), lambda b, p, j: (0, 0, 0)),   # b1
                pl.BlockSpec((1, C, hidden), lambda b, p, j: (0, 0, 0)),   # w2
                pl.BlockSpec((1, C, 1), lambda b, p, j: (0, 0, 0)),        # b2
                pl.BlockSpec((1, C, 1), lambda b, p, j: (0, 0, 0)),        # spatial w
            ],
            # phase 0 parks on block (b,0,0); phase 1 revisits & rewrites it
            # at j==0 before it is ever written back, then streams j forward.
            out_specs=pl.BlockSpec((1, C, T), lambda b, p, j: (b, 0, j * p)),
            scratch_shapes=[
                pltpu.VMEM((1, C, 1), jnp.float32),   # GAP accumulator
                pltpu.VMEM((1, C, 1), jnp.float32),   # channel gate (chn)
            ],
        ),
        compiler_params=pltpu.CompilerParams(
            dimension_semantics=("parallel", "arbitrary", "arbitrary"),
            vmem_limit_bytes=_VMEM_LIMIT_BYTES,
        ),
        cost_estimate=cost,
    )(x3, pk["w1k"], pk["b1k"], pk["w2k"], pk["b2k"], pk["wsk"])


# ---------------------------------------------------------------------------
# SCSEBlock forward
# ---------------------------------------------------------------------------
@functools.partial(jax.jit,
                   static_argnames=("ordinary", "force_tiled", "max_tile_hw"))
def scse_forward(x_nchw, params, ordinary=True, force_tiled=False,
                 max_tile_hw=None):
    B, C, H, W = x_nchw.shape
    HW = H * W
    x3 = x_nchw.reshape(B, C, HW)          # free (metadata) reshape, no dtype cast

    slab_f32_bytes = C * HW * 4
    if (not force_tiled) and slab_f32_bytes <= _FULLHW_SLAB_LIMIT:
        out3 = scse_fullhw_pallas(x3, params, ordinary)
    else:
        out3 = scse_tiled_pallas(x3, params, ordinary, max_tile_hw)
    return out3.reshape(B, C, H, W)


# ---------------------------------------------------------------------------
# parameters (deterministic, synthetic), pre-shaped once for the kernels
# ---------------------------------------------------------------------------
def make_scse_params(key, channel, reduction=16):
    hidden = max(1, int(channel // reduction))
    k1, k2, k3 = jax.random.split(key, 3)
    # PyTorch layouts: Linear(C,hidden).weight = (hidden, C);
    #                  Linear(hidden,C).weight = (C, hidden);
    #                  Conv2d(C,1,1,bias=False).weight = (1, C, 1, 1)
    w1 = (1.0 / channel ** 0.5) * jax.random.normal(k1, (hidden, channel), jnp.float32)
    b1 = 0.01 * jnp.arange(hidden, dtype=jnp.float32)
    w2 = (1.0 / hidden ** 0.5) * jax.random.normal(k2, (channel, hidden), jnp.float32)
    b2 = 0.01 * jnp.arange(channel, dtype=jnp.float32)
    w_spa = (1.0 / channel ** 0.5) * jax.random.normal(k3, (1, channel, 1, 1), jnp.float32)
    return {
        "w1k": jnp.transpose(w1)[None],            # (1, C, hidden)  == w1.T
        "b1k": b1.reshape(1, 1, hidden),           # (1, 1, hidden)
        "w2k": w2[None],                           # (1, C, hidden)  (PyTorch layout)
        "b2k": b2.reshape(1, channel, 1),          # (1, C, 1)
        "wsk": w_spa.reshape(1, channel, 1),       # (1, C, 1)
    }


# ---------------------------------------------------------------------------
# pure-jnp reference
# ---------------------------------------------------------------------------
def scse_reference(x, params, ordinary=True):
    B, C, H, W = x.shape
    xf = x.astype(jnp.float32)
    gap = xf.mean(axis=(2, 3))                                   # (B, C)
    w1t = params["w1k"][0]                                       # (C, hidden)
    b1 = params["b1k"][0, 0]                                     # (hidden,)
    w2 = params["w2k"][0]                                        # (C, hidden)
    b2 = params["b2k"][0, :, 0]                                  # (C,)
    ws = params["wsk"][0, :, 0]                                  # (C,)
    h = jax.nn.relu(gap @ w1t + b1)                              # (B, hidden)
    chn = jax.nn.sigmoid(h @ w2.T + b2)                          # (B, C)
    spa = jax.nn.sigmoid(jnp.einsum("bchw,c->bhw", xf, ws))      # (B, H, W)
    chn_se = xf * chn[:, :, None, None]
    spa_se = xf * spa[:, None, :, :]
    if ordinary:
        return (chn_se + spa_se).astype(x.dtype)
    return (xf * chn_se * spa_se).astype(x.dtype)


# ---------------------------------------------------------------------------
if __name__ == "__main__":
    key = jax.random.PRNGKey(0)
    kx, kp = jax.random.split(key)

    B, C, H, W = 2, 64, 16, 16          # reduction=16 => hidden=4
    params = make_scse_params(kp, C, reduction=16)
    x = jax.random.normal(kx, (B, C, H, W), jnp.float32)

    # Path A (single-pass full-HW kernel), ordinary=True
    out = jax.block_until_ready(scse_forward(x, params, ordinary=True))
    assert out.shape == (B, C, H, W), out.shape
    assert bool(jnp.isfinite(out).all())
    ref = scse_reference(x, params, ordinary=True)
    assert bool(jnp.allclose(out, ref, rtol=1e-5, atol=1e-5)), \
        float(jnp.abs(out - ref).max())

    # Path A, ordinary=False (x * chn_se * spa_se)
    out2 = jax.block_until_ready(scse_forward(x, params, ordinary=False))
    ref2 = scse_reference(x, params, ordinary=False)
    assert bool(jnp.allclose(out2, ref2, rtol=1e-5, atol=1e-5)), \
        float(jnp.abs(out2 - ref2).max())

    # Path B (fused two-phase tiled kernel) on a ragged spatial size
    # (HW = 169 is not a multiple of 128 -> exercises the masked GAP tail and
    #  the partial-output-block writeback).
    H2 = W2 = 13
    x_r = jax.random.normal(kx, (B, C, H2, W2), jnp.float32)
    out3 = jax.block_until_ready(
        scse_forward(x_r, params, ordinary=True, force_tiled=True, max_tile_hw=128))
    ref3 = scse_reference(x_r, params, ordinary=True)
    assert bool(jnp.allclose(out3, ref3, rtol=1e-5, atol=1e-5)), \
        float(jnp.abs(out3 - ref3).max())

    print("KERNEL_OK")
</pallas_src>

<mosaic_0001>
module attributes {stable_mosaic.version = 11 : i64} {
  func.func @_scse_fullhw_kernel(%arg0: i32, %arg1: memref<1x64x256xf32, #tpu.memory_space<vmem>>, %arg2: memref<1x64x4xf32, #tpu.memory_space<vmem>>, %arg3: memref<1x1x4xf32, #tpu.memory_space<vmem>>, %arg4: memref<1x64x4xf32, #tpu.memory_space<vmem>>, %arg5: memref<1x64x1xf32, #tpu.memory_space<vmem>>, %arg6: memref<1x64x1xf32, #tpu.memory_space<vmem>>, %arg7: memref<1x64x256xf32, #tpu.memory_space<vmem>>) attributes {dimension_semantics = [#tpu.dimension_semantics<parallel>], iteration_bounds = array<i64: 2>, scalar_prefetch = 0 : i64, scratch_operands = 0 : i64, tpu.core_type = #tpu.core_type<tc>, window_params = [{transform_indices = @transform_0, window_bounds = array<i64: 1, 64, 256>}, {pipeline_mode = #tpu.pipeline_mode<synchronous>, transform_indices = @transform_1, window_bounds = array<i64: 1, 64, 4>}, {pipeline_mode = #tpu.pipeline_mode<synchronous>, transform_indices = @transform_2, window_bounds = array<i64: 1, 1, 4>}, {pipeline_mode = #tpu.pipeline_mode<synchronous>, transform_indices = @transform_3, window_bounds = array<i64: 1, 64, 4>}, {pipeline_mode = #tpu.pipeline_mode<synchronous>, transform_indices = @transform_4, window_bounds = array<i64: 1, 64, 1>}, {pipeline_mode = #tpu.pipeline_mode<synchronous>, transform_indices = @transform_5, window_bounds = array<i64: 1, 64, 1>}, {transform_indices = @transform_6, window_bounds = array<i64: 1, 64, 256>}]} {
    %c0 = arith.constant 0 : index
    %c0_0 = arith.constant 0 : index
    %c0_1 = arith.constant 0 : index
    %0 = vector.load %arg1[%c0, %c0_0, %c0_1] : memref<1x64x256xf32, #tpu.memory_space<vmem>>, vector<1x64x256xf32>
    %cst = arith.constant dense<0.000000e+00> : vector<1x64xf32>
    %1 = vector.multi_reduction <add>, %0, %cst [2] : vector<1x64x256xf32> to vector<1x64xf32>
    %2 = vector.shape_cast %1 : vector<1x64xf32> to vector<1x64x1xf32>
    %cst_2 = arith.constant 3.906250e-03 : f32
    %3 = vector.broadcast %cst_2 : f32 to vector<1x64x1xf32>
    %4 = arith.mulf %2, %3 : vector<1x64x1xf32>
    %c0_3 = arith.constant 0 : index
    %c0_4 = arith.constant 0 : index
    %c0_5 = arith.constant 0 : index
    %5 = vector.load %arg2[%c0_3, %c0_4, %c0_5] : memref<1x64x4xf32, #tpu.memory_space<vmem>>, vector<1x64x4xf32>
    %6 = vector.broadcast %4 : vector<1x64x1xf32> to vector<1x64x4xf32>
    %7 = arith.mulf %6, %5 : vector<1x64x4xf32>
    %cst_6 = arith.constant dense<0.000000e+00> : vector<1x4xf32>
    %8 = vector.multi_reduction <add>, %7, %cst_6 [1] : vector<1x64x4xf32> to vector<1x4xf32>
    %9 = vector.shape_cast %8 : vector<1x4xf32> to vector<1x1x4xf32>
    %c0_7 = arith.constant 0 : index
    %c0_8 = arith.constant 0 : index
    %c0_9 = arith.constant 0 : index
    %10 = vector.load %arg3[%c0_7, %c0_8, %c0_9] : memref<1x1x4xf32, #tpu.memory_space<vmem>>, vector<1x1x4xf32>
    %11 = arith.addf %9, %10 : vector<1x1x4xf32>
    %cst_10 = arith.constant 0.000000e+00 : f32
    %12 = vector.broadcast %cst_10 : f32 to vector<1x1x4xf32>
    %13 = arith.maximumf %11, %12 : vector<1x1x4xf32>
    %c0_11 = arith.constant 0 : index
    %c0_12 = arith.constant 0 : index
    %c0_13 = arith.constant 0 : index
    %14 = vector.load %arg4[%c0_11, %c0_12, %c0_13] : memref<1x64x4xf32, #tpu.memory_space<vmem>>, vector<1x64x4xf32>
    %15 = vector.broadcast %13 : vector<1x1x4xf32> to vector<1x64x4xf32>
    %16 = arith.mulf %15, %14 : vector<1x64x4xf32>
    %cst_14 = arith.constant dense<0.000000e+00> : vector<1x64xf32>
    %17 = vector.multi_reduction <add>, %16, %cst_14 [2] : vector<1x64x4xf32> to vector<1x64xf32>
    %18 = vector.shape_cast %17 : vector<1x64xf32> to vector<1x64x1xf32>
    %c0_15 = arith.constant 0 : index
    %c0_16 = arith.constant 0 : index
    %c0_17 = arith.constant 0 : index
    %19 = vector.load %arg5[%c0_15, %c0_16, %c0_17] : memref<1x64x1xf32, #tpu.memory_space<vmem>>, vector<1x64x1xf32>
    %20 = arith.addf %18, %19 : vector<1x64x1xf32>
    %21 = arith.negf %20 : vector<1x64x1xf32>
    %22 = math.exp %21 : vector<1x64x1xf32>
    %cst_18 = arith.constant 1.000000e+00 : f32
    %23 = vector.broadcast %cst_18 : f32 to vector<1x64x1xf32>
    %24 = arith.addf %23, %22 : vector<1x64x1xf32>
    %25 = arith.divf %23, %24 : vector<1x64x1xf32>
    %c0_19 = arith.constant 0 : index
    %c0_20 = arith.constant 0 : index
    %c0_21 = arith.constant 0 : index
    %26 = vector.load %arg6[%c0_19, %c0_20, %c0_21] : memref<1x64x1xf32, #tpu.memory_space<vmem>>, vector<1x64x1xf32>
    %27 = vector.broadcast %26 : vector<1x64x1xf32> to vector<1x64x256xf32>
    %28 = arith.mulf %0, %27 : vector<1x64x256xf32>
    %cst_22 = arith.constant dense<0.000000e+00> : vector<1x256xf32>
    %29 = vector.multi_reduction <add>, %28, %cst_22 [1] : vector<1x64x256xf32> to vector<1x256xf32>
    %30 = vector.shape_cast %29 : vector<1x256xf32> to vector<1x1x256xf32>
    %31 = arith.negf %30 : vector<1x1x256xf32>
    %32 = math.exp %31 : vector<1x1x256xf32>
    %cst_23 = arith.constant 1.000000e+00 : f32
    %33 = vector.broadcast %cst_23 : f32 to vector<1x1x256xf32>
    %34 = arith.addf %33, %32 : vector<1x1x256xf32>
    %35 = arith.divf %33, %34 : vector<1x1x256xf32>
    %36 = vector.broadcast %25 : vector<1x64x1xf32> to vector<1x64x256xf32>
    %37 = vector.broadcast %35 : vector<1x1x256xf32> to vector<1x64x256xf32>
    %38 = arith.addf %36, %37 : vector<1x64x256xf32>
    %39 = arith.mulf %0, %38 : vector<1x64x256xf32>
    %c0_24 = arith.constant 0 : index
    %c0_25 = arith.constant 0 : index
    %c0_26 = arith.constant 0 : index
    %40 = vector.load %arg7[%c0_24, %c0_25, %c0_26] : memref<1x64x256xf32, #tpu.memory_space<vmem>>, vector<1x64x256xf32>
    tpu.vector_store %arg7[%c0_24, %c0_25, %c0_26], %39 {strides = array<i32>} : memref<1x64x256xf32, #tpu.memory_space<vmem>>, vector<1x64x256xf32>,
    return
  }
  func.func @transform_0(%arg0: i32) -> (i32, i32, i32) {
    %c0_i32 = arith.constant 0 : i32
    %c0_i32_0 = arith.constant 0 : i32
    %c0_i32_1 = arith.constant 0 : i32
    return %arg0, %c0_i32, %c0_i32_0 : i32, i32, i32
  }
  func.func @transform_1(%arg0: i32) -> (i32, i32, i32) {
    %c0_i32 = arith.constant 0 : i32
    %c0_i32_0 = arith.constant 0 : i32
    %c0_i32_1 = arith.constant 0 : i32
    %c0_i32_2 = arith.constant 0 : i32
    return %c0_i32, %c0_i32_0, %c0_i32_1 : i32, i32, i32
  }
  func.func @transform_2(%arg0: i32) -> (i32, i32, i32) {
    %c0_i32 = arith.constant 0 : i32
    %c0_i32_0 = arith.constant 0 : i32
    %c0_i32_1 = arith.constant 0 : i32
    %c0_i32_2 = arith.constant 0 : i32
    return %c0_i32, %c0_i32_0, %c0_i32_1 : i32, i32, i32
  }
  func.func @transform_3(%arg0: i32) -> (i32, i32, i32) {
    %c0_i32 = arith.constant 0 : i32
    %c0_i32_0 = arith.constant 0 : i32
    %c0_i32_1 = arith.constant 0 : i32
    %c0_i32_2 = arith.constant 0 : i32
    return %c0_i32, %c0_i32_0, %c0_i32_1 : i32, i32, i32
  }
  func.func @transform_4(%arg0: i32) -> (i32, i32, i32) {
    %c0_i32 = arith.constant 0 : i32
    %c0_i32_0 = arith.constant 0 : i32
    %c0_i32_1 = arith.constant 0 : i32
    %c0_i32_2 = arith.constant 0 : i32
    return %c0_i32, %c0_i32_0, %c0_i32_1 : i32, i32, i32
  }
  func.func @transform_5(%arg0: i32) -> (i32, i32, i32) {
    %c0_i32 = arith.constant 0 : i32
    %c0_i32_0 = arith.constant 0 : i32
    %c0_i32_1 = arith.constant 0 : i32
    %c0_i32_2 = arith.constant 0 : i32
    return %c0_i32, %c0_i32_0, %c0_i32_1 : i32, i32, i32
  }
  func.func @transform_6(%arg0: i32) -> (i32, i32, i32) {
    %c0_i32 = arith.constant 0 : i32
    %c0_i32_0 = arith.constant 0 : i32
    %c0_i32_1 = arith.constant 0 : i32
    return %arg0, %c0_i32, %c0_i32_0 : i32, i32, i32
  }
}

</mosaic_0001>

<bundles_post_ra>
// kernel: scse_forward.1
= control target key start
LH: loop header
LB: loop body
LE: loop exit
PB: predicated region body
PF: predicated region fallthrough
CT: control target
= control target key end

     0   :  { %s940_s21 = smov 0   ;;  %s1306_s0 = inlined_call_operand.vmem [shape: f32[2,64,256], index: 0, kind: input, shape index: {}]   ;;  %s1307_s1 = inlined_call_operand.vmem [shape: f32[1,64,4], index: 1, kind: input, shape index: {}]   ;;  %s1308_s2 = inlined_call_operand.vmem [shape: f32[1,1,4], index: 2, kind: input, shape index: {}]   ;;  %s1309_s3 = inlined_call_operand.vmem [shape: f32[1,64,4], index: 3, kind: input, shape index: {}]   ;;  %s1310_s4 = inlined_call_operand.vmem [shape: f32[1,64,1], index: 4, kind: input, shape index: {}]   ;;  %s1311_s5 = inlined_call_operand.vmem [shape: f32[1,64,1], index: 5, kind: input, shape index: {}]   ;;  %s1312_s6 = inlined_call_operand.vmem [shape: f32[2,64,256], index: 6, kind: output, shape index: {}]  }
   0x1 LB: > { %s821_s22 = sadd.s32 4294967295, %s902_s21   ;;  %p825_p0 = scmp.ge.s32.totalorder %s902_s21, 1  ;;  %s902_s21 = sphi %s940_s21, %s16_s21  }
   0x2   : > { %p212_p1 = scmp.lt.s32.totalorder %s902_s21, 3 }
   0x4   : > { %p213_p2 = pnand %p825_p0, %p212_p1 }
   0x5   : > { %p242_p3 = scmp.lt.s32.totalorder (!%p213_p2), %s821_s22, 1 }
   0x6   : > { %216 = sbr.rel (%p213_p2) target bundleno = 471 (0x1d7), region = 44 }
   0xb   : > { %v904_v0 = vmov 0   ;;  %s1324_s22 = smov (!%p242_p3, %s821_s22), 1  ;;  %v550_v25 = vld [vmem:[%s1311_s5] sm:$0xff]  ;;  %v551_v26 = vld [vmem:[%s1311_s5 + $0x8] sm:$0xff]  ;;  %v302_v33 = vld [vmem:[%s1307_s1 + $0x10] sm:$0xff]  ;;  %vm316_vm0 = vcmask 31744  }
   0xc   : > { %853 = vset.pattern.permute.xlu1 %v904_v0  ;;  %854 = vset.pattern.permute.xlu2 %v904_v0  ;;  %s842_s23 = sshll.u32 %s1324_s22, 7  ;;  %v300_v31 = vld [vmem:[%s1307_s1] sm:$0xff]  ;;  %v301_v34 = vld [vmem:[%s1307_s1 + $0x8] sm:$0xff]  ;;  %v303_v38 = vld [vmem:[%s1307_s1 + $0x18] sm:$0xff] }
   0xd   : > { %855 = vset.pattern.permute.xlu0 %v904_v0  ;;  %s246_s26 = scalar_lea.vmem %s1306_s0, %s842_s23  ;;  %v304_v46 = vld [vmem:[%s1307_s1 + $0x20] sm:$0xff]  ;;  %v305_v48 = vld [vmem:[%s1307_s1 + $0x28] sm:$0xff]  ;;  %v306_v57 = vld [vmem:[%s1307_s1 + $0x30] sm:$0xff]  ;;  %s1269_s8 = scalar_lea.vmem %s1312_s6, %s842_s23 }
   0xe   : > { %v956_v1 = vld [vmem:[%s246_s26] sm:$0xff]  ;;  %v958_v2 = vld [vmem:[%s246_s26 + $0x8] sm:$0xff]  ;;  %v974_v10 = vld [vmem:[%s246_s26 + $0x10] sm:$0xff] }
   0xf   : > { %v960_v3 = vld [vmem:[%s246_s26 + $0x20] sm:$0xff]  ;;  %v268_v4 = vadd.f32 %v958_v2, %v956_v1  ;;  %v964_v5 = vld [vmem:[%s246_s26 + $0x28] sm:$0xff]  ;;  %v976_v11 = vld [vmem:[%s246_s26 + $0x18] sm:$0xff] }
  0x10   : > { %v966_v6 = vld [vmem:[%s246_s26 + $0x40] sm:$0xff]  ;;  %v968_v7 = vld [vmem:[%s246_s26 + $0x48] sm:$0xff]  ;;  %v274_v8 = vadd.f32 %v964_v5, %v960_v3  ;;  %v978_v12 = vld [vmem:[%s246_s26 + $0x30] sm:$0xff]  ;;  %v271_v16 = vadd.f32 %v976_v11, %v974_v10 }
  0x11   : > { %v280_v9 = vadd.f32 %v968_v7, %v966_v6  ;;  %269 = vadd.xlane.f32.xlu0 %v268_v4  ;;  %v980_v13 = vld [vmem:[%s246_s26 + $0x38] sm:$0xff]  ;;  %v982_v14 = vld [vmem:[%s246_s26 + $0x50] sm:$0xff]  ;;  %v992_v19 = vld [vmem:[%s246_s26 + $0x60] sm:$0xff] }
  0x12   : > { %275 = vadd.xlane.f32.xlu1 %v274_v8  ;;  %v984_v15 = vld [vmem:[%s246_s26 + $0x58] sm:$0xff]  ;;  %v277_v17 = vadd.f32 %v980_v13, %v978_v12  ;;  %v994_v20 = vld [vmem:[%s246_s26 + $0x68] sm:$0xff]  ;;  %v996_v21 = vld [vmem:[%s246_s26 + $0x70] sm:$0xff] }
  0x13   : > { %281 = vadd.xlane.f32.xlu2 %v280_v9  ;;  %v283_v18 = vadd.f32 %v984_v15, %v982_v14  ;;  %v998_v22 = vld [vmem:[%s246_s26 + $0x78] sm:$0xff]  ;;  %v286_v23 = vadd.f32 %v994_v20, %v992_v19 }
  0x14   : > { %v289_v24 = vadd.f32 %v998_v22, %v996_v21  ;;  %v307_v60 = vld [vmem:[%s1307_s1 + $0x38] sm:$0xff] }
  0x19   : > { %272 = vadd.xlane.f32.xlu0 %v271_v16 }
  0x1a   : > { %278 = vadd.xlane.f32.xlu1 %v277_v17 }
  0x1b   : > { %284 = vadd.xlane.f32.xlu2 %v283_v18 }
  0x21   : > { %287 = vadd.xlane.f32.xlu0 %v286_v23 }
  0x22   : > { %290 = vadd.xlane.f32.xlu1 %v289_v24 }
  0x33   : > { %565 = vperm.xlu2 %854, %v551_v26  }
  0x3b   : > { %560 = vperm.xlu1 %853, %v550_v25  }
  0x84   : > { %v270_v27 = vpop.xlane.xlu0 %269 }
  0x85   : > { %v276_v28 = vpop.xlane.xlu1 %275  ;;  %v292_v30 = vmul.f32 0.00390625, %v270_v27 }
  0x86   : > { %v282_v29 = vpop.xlane.xlu2 %281  ;;  %v294_v32 = vmul.f32 0.00390625, %v276_v28 }
  0x87   : > { %v308_v36 = vmul.f32 %v300_v31, %v292_v30  ;;  %v296_v43 = vmul.f32 0.00390625, %v282_v29  ;;  %v338_v31 = vld [vmem:[%s1308_s2] sm:$0x1] }
  0x88   : > { %v310_v42 = vmul.f32 %v302_v33, %v294_v32 }
  0x89   : > { %v317_v49 = vsel %vm316_vm0, %v308_v36, 0.0  ;;  %v312_v53 = vmul.f32 %v304_v46, %v296_v43  ;;  %v342_v36 = vld [vmem:[%s1309_s3 + $0x8] sm:$0xff]  ;;  %v345_v46 = vld [vmem:[%s1309_s3 + $0x20] sm:$0xff] }
  0x8a   : > { %v320_v52 = vsel %vm316_vm0, %v310_v42, 0.0 }
  0x8b   : > { %v324_v0 = vsel %vm316_vm0, %v312_v53, 0.0 }
  0x8c   : > { %v273_v35 = vpop.xlane.xlu0 %272 }
  0x8d   : > { %v293_v37 = vmul.f32 0.00390625, %v273_v35  ;;  %v279_v39 = vpop.xlane.xlu1 %278  ;;  %v343_v35 = vld [vmem:[%s1309_s3 + $0x10] sm:$0xff] }
  0x8e   : > { %v285_v40 = vpop.xlane.xlu2 %284  ;;  %v295_v41 = vmul.f32 0.00390625, %v279_v39 }
  0x8f   : > { %v309_v44 = vmul.f32 %v301_v34, %v293_v37  ;;  %v297_v45 = vmul.f32 0.00390625, %v285_v40  ;;  %v341_v37 = vld [vmem:[%s1309_s3] sm:$0xff] }
  0x90   : > { %v311_v47 = vmul.f32 %v303_v38, %v295_v41 }
  0x91   : > { %v318_v50 = vsel %vm316_vm0, %v309_v44, 0.0  ;;  %v313_v55 = vmul.f32 %v305_v48, %v297_v45  ;;  %v346_v45 = vld [vmem:[%s1309_s3 + $0x28] sm:$0xff] }
  0x92   : > { %v319_v51 = vadd.f32 %v318_v50, %v317_v49  ;;  %v322_v54 = vsel %vm316_vm0, %v311_v47, 0.0  ;;  %v344_v47 = vld [vmem:[%s1309_s3 + $0x18] sm:$0xff] }
  0x93   : > { %v326_v4 = vsel %vm316_vm0, %v313_v55, 0.0  ;;  %v347_v55 = vld [vmem:[%s1309_s3 + $0x30] sm:$0xff] }
  0x94   : > { %v321_v56 = vadd.f32 %v320_v52, %v319_v51  ;;  %v288_v58 = vpop.xlane.xlu0 %287 }
  0x95   : > { %v298_v59 = vmul.f32 0.00390625, %v288_v58  ;;  %v291_v61 = vpop.xlane.xlu1 %290 }
  0x96   : > { %v323_v62 = vadd.f32 %v322_v54, %v321_v56  ;;  %v299_v63 = vmul.f32 0.00390625, %v291_v61  ;;  %v348_v54 = vld [vmem:[%s1309_s3 + $0x38] sm:$0xff]  ;;  %v552_v61 = vld [vmem:[%s1311_s5 + $0x10] sm:$0xff] }
  0x97   : > { %v314_v8 = vmul.f32 %v306_v57, %v298_v59 }
  0x98   : > { %v325_v9 = vadd.f32 %v324_v0, %v323_v62  ;;  %v315_v16 = vmul.f32 %v307_v60, %v299_v63  ;;  %v554_v60 = vld [vmem:[%s1311_s5 + $0x20] sm:$0xff]  ;;  %v553_v62 = vld [vmem:[%s1311_s5 + $0x18] sm:$0xff]  ;;  %v556_v63 = vld [vmem:[%s1311_s5 + $0x30] sm:$0xff] }
  0x99   : > { %v328_v17 = vsel %vm316_vm0, %v314_v8, 0.0  ;;  %v555_v0 = vld [vmem:[%s1311_s5 + $0x28] sm:$0xff] }
  0x9a   : > { %v327_v18 = vadd.f32 %v326_v4, %v325_v9  ;;  %v330_v23 = vsel %vm316_vm0, %v315_v16, 0.0  ;;  %v557_v4 = vld [vmem:[%s1311_s5 + $0x38] sm:$0xff]  ;;  %v566_v9 = vpop.permute.xlu2 %565  ;;  %v384_v16 = vld [vmem:[%s1310_s4 + $0x10] sm:$0xff] }
  0x9c   : > { %v329_v24 = vadd.f32 %v328_v17, %v327_v18  ;;  %v383_v17 = vld [vmem:[%s1310_s4 + $0x8] sm:$0xff]  ;;  %v382_v18 = vld [vmem:[%s1310_s4] sm:$0xff] }
  0x9e   : > { %v331_v25 = vadd.f32 %v330_v23, %v329_v24 }
  0xa0   : > { %v332_v26 = vrot.slane %v331_v25, 4 }
  0xa2   : > { %v333_v27 = vadd.f32 %v332_v26, %v331_v25 }
  0xa4   : > { %v334_v28 = vrot.slane %v333_v27, 2 }
  0xa6   : > { %v335_v29 = vadd.f32 %v334_v28, %v333_v27 }
  0xa8   : > { %v336_v30 = vrot.slane %v335_v29, 1 }
  0xaa   : > { %v337_v32 = vadd.f32 %v336_v30, %v335_v29 }
  0xac   : > { %v339_v33 = vadd.f32 %v338_v31, %v337_v32  ;;  %v387_v32 = vld [vmem:[%s1310_s4 + $0x28] sm:$0xff] }
  0xad   : > { %v561_v8 = vpop.permute.xlu1 %560 }
  0xae   : > { %v340_v34 = vmax.f32 %v339_v33, 0.0  ;;  %v386_v33 = vld [vmem:[%s1310_s4 + $0x20] sm:$0xff] }
  0xb0   : > { %v349_v38 = vperm.slane %v340_v34, 0  ;;  %v385_v34 = vld [vmem:[%s1310_s4 + $0x18] sm:$0xff] }
  0xb2   : > { %v352_v39 = vmul.f32 %v349_v38, %v343_v35  ;;  %v351_v40 = vmul.f32 %v349_v38, %v342_v36  ;;  %v350_v41 = vmul.f32 %v349_v38, %v341_v37  ;;  %v355_v48 = vmul.f32 %v349_v38, %v346_v45 }
  0xb3   : > { %v354_v49 = vmul.f32 %v349_v38, %v345_v46  ;;  %v353_v50 = vmul.f32 %v349_v38, %v344_v47  ;;  %v357_v56 = vmul.f32 %v349_v38, %v348_v54  ;;  %v356_v57 = vmul.f32 %v349_v38, %v347_v55  ;;  %v388_v55 = vld [vmem:[%s1310_s4 + $0x30] sm:$0xff] }
  0xb4   : > { %v364_v42 = vsel %vm316_vm0, %v352_v39, 0.0  ;;  %v361_v43 = vsel %vm316_vm0, %v351_v40, 0.0  ;;  %v358_v44 = vsel %vm316_vm0, %v350_v41, 0.0  ;;  %v373_v51 = vsel %vm316_vm0, %v355_v48, 0.0 }
  0xb5   : > { %365 = vadd.xlane.f32.xlu1 %v364_v42  ;;  %362 = vadd.xlane.f32.xlu0 %v361_v43  ;;  %v370_v52 = vsel %vm316_vm0, %v354_v49, 0.0  ;;  %v367_v53 = vsel %vm316_vm0, %v353_v50, 0.0  ;;  %v379_v58 = vsel %vm316_vm0, %v357_v56, 0.0  ;;  %v376_v59 = vsel %vm316_vm0, %v356_v57, 0.0 }
  0xb6   : > { %359 = vadd.xlane.f32.xlu2 %v358_v44  ;;  %v600_v44 = vmul.f32 %v566_v9, %v974_v10  ;;  %v598_v47 = vmul.f32 %v561_v8, %v956_v1  ;;  %v599_v54 = vmul.f32 %v561_v8, %v958_v2 }
  0xb8   : > { %v1132_v57 = vadd.f32 %v600_v44, %v598_v47 }
  0xbd   : > { %374 = vadd.xlane.f32.xlu1 %v373_v51  ;;  %371 = vadd.xlane.f32.xlu0 %v370_v52  ;;  %v389_v52 = vld [vmem:[%s1310_s4 + $0x38] sm:$0xff] }
  0xbe   : > { %368 = vadd.xlane.f32.xlu2 %v367_v53  ;;  %v601_v53 = vmul.f32 %v566_v9, %v976_v11 }
  0xc5   : > { %380 = vadd.xlane.f32.xlu0 %v379_v58 }
  0xc6   : > { %377 = vadd.xlane.f32.xlu2 %v376_v59 }
  0xd6   : > { %580 = vperm.xlu1 %853, %v554_v60  }
  0xd9   : > { %570 = vperm.xlu0 %855, %v552_v61  }
  0xde   : > { %575 = vperm.xlu2 %854, %v553_v62   ;;  %590 = vperm.xlu1 %853, %v556_v63  }
  0xe6   : > { %585 = vperm.xlu2 %854, %v555_v0  }
  0xee   : > { %595 = vperm.xlu2 %854, %v557_v4   ;;  %v1137_v4 = vadd.f32 %v601_v53, %v599_v54 }
 0x128   : > { %v366_v23 = vpop.xlane.xlu1 %365  ;;  %v363_v24 = vpop.xlane.xlu0 %362 }
 0x129   : > { %v392_v25 = vadd.f32 %v384_v16, %v366_v23  ;;  %v391_v26 = vadd.f32 %v383_v17, %v363_v24  ;;  %v360_v27 = vpop.xlane.xlu2 %359 }
 0x12a   : > { %v390_v28 = vadd.f32 %v382_v18, %v360_v27 }
 0x12b   : > { %v832_v29 = vmul.f32 -1.442695, %v392_v25  ;;  %v831_v30 = vmul.f32 -1.442695, %v391_v26 }
 0x12c   : > { %v830_v31 = vmul.f32 -1.442695, %v390_v28 }
 0x12d   : > { %856 = vpow2.f32 %v832_v29 }
 0x12e   : > { %858 = vpow2.f32 %v831_v30 }
 0x12f   : > { %860 = vpow2.f32 %v830_v31 }
 0x130   : > { %v375_v35 = vpop.xlane.xlu1 %374  ;;  %v372_v36 = vpop.xlane.xlu0 %371 }
 0x131   : > { %v395_v37 = vadd.f32 %v387_v32, %v375_v35  ;;  %v394_v38 = vadd.f32 %v386_v33, %v372_v36  ;;  %v369_v39 = vpop.xlane.xlu2 %368 }
 0x132   : > { %v393_v40 = vadd.f32 %v385_v34, %v369_v39 }
 0x133   : > { %v857_v41 = vpop.eup %856  ;;  %v835_v42 = vmul.f32 -1.442695, %v395_v37  ;;  %v834_v49 = vmul.f32 -1.442695, %v394_v38 }
 0x134   : > { %v859_v43 = vpop.eup %858  ;;  %v1114_v45 = vadd.f32 1.0, %v857_v41  ;;  %v833_v51 = vmul.f32 -1.442695, %v393_v40 }
 0x135   : > { %v861_v46 = vpop.eup %860  ;;  %v1117_v48 = vadd.f32 1.0, %v859_v43  ;;  %862 = vpow2.f32 %v835_v42 }
 0x136   : > { %864 = vrcp.f32 %v1114_v45  ;;  %v1120_v50 = vadd.f32 1.0, %v861_v46  ;;  %v469_v60 = vand.u32 2147483647, %v1114_v45  ;;  %vm465_vm1 = vweird.f32 %v1114_v45 }
 0x137   : > { %866 = vrcp.f32 %v1117_v48  ;;  %v454_v62 = vand.u32 2147483647, %v1117_v48  ;;  %v456_v63 = vand.u32 2147483648, %v1117_v48  ;;  %v471_v9 = vand.u32 2147483648, %v1114_v45 }
 0x138   : > { %868 = vrcp.f32 %v1120_v50  ;;  %v381_v56 = vpop.xlane.xlu0 %380  ;;  %vm450_vm2 = vweird.f32 %v1117_v48  ;;  %v439_v23 = vand.u32 2147483647, %v1120_v50  ;;  %vm1146_vm3 = vcmp.eq.f32.partialorder %v469_v60, 8.507059e+37 }
 0x139   : > { %870 = vpow2.f32 %v834_v49  ;;  %v397_v58 = vadd.f32 %v389_v52, %v381_v56  ;;  %v378_v59 = vpop.xlane.xlu2 %377  ;;  %vm435_vm4 = vweird.f32 %v1120_v50  ;;  %v441_v27 = vand.u32 2147483648, %v1120_v50 }
 0x13a   : > { %872 = vpow2.f32 %v833_v51  ;;  %v396_v61 = vadd.f32 %v388_v55, %v378_v59  ;;  %vm1154_vm5 = vcmp.eq.f32.partialorder %v454_v62, 8.507059e+37  ;;  %v457_v31 = vor.u32 1.1754944e-38, %v456_v63 }
 0x13b   : > { %v863_v0 = vpop.eup %862  ;;  %v837_v8 = vmul.f32 -1.442695, %v397_v58  ;;  %v472_v34 = vor.u32 1.1754944e-38, %v471_v9  ;;  %vm1161_vm7 = vcmp.eq.f32.partialorder %v439_v23, 8.507059e+37  ;;  %v442_v44 = vor.u32 1.1754944e-38, %v441_v27 }
 0x13c   : > { %v865_v16 = vpop.eup %864  ;;  %v1141_v17 = vadd.f32 1.0, %v863_v0  ;;  %v836_v18 = vmul.f32 -1.442695, %v396_v61 }
 0x13d   : > { %v867_v24 = vpop.eup %866  ;;  %874 = vpow2.f32 %v837_v8  ;;  %v461_v25 = vmul.f32 %v865_v16, %v1114_v45  ;;  %vm466_vm6 = vweird.f32 %v865_v16 }
 0x13e   : > { %v869_v28 = vpop.eup %868  ;;  %876 = vrcp.f32 %v1141_v17  ;;  %v446_v29 = vmul.f32 %v867_v24, %v1117_v48  ;;  %vm451_vm8 = vweird.f32 %v867_v24  ;;  %v514_v52 = vand.u32 2147483647, %v1141_v17  ;;  %vm467_vm10 = vmor %vm465_vm1, %vm466_vm6 }
 0x13f   : > { %v871_v32 = vpop.eup %870  ;;  %878 = vpow2.f32 %v836_v18  ;;  %v462_v33 = vsub.f32 1.0, %v461_v25  ;;  %v431_v35 = vmul.f32 %v869_v28, %v1120_v50  ;;  %vm436_vm9 = vweird.f32 %v869_v28  ;;  %vm452_vm12 = vmor %vm450_vm2, %vm451_vm8 }
 0x140   : > { %v873_v36 = vpop.eup %872  ;;  %v1159_v37 = vadd.f32 1.0, %v871_v32  ;;  %v447_v38 = vsub.f32 1.0, %v446_v29  ;;  %vm510_vm11 = vweird.f32 %v1141_v17  ;;  %v516_v58 = vand.u32 2147483648, %v1141_v17  ;;  %vm437_vm13 = vmor %vm435_vm4, %vm436_vm9 }
 0x141   : > { %v1165_v40 = vadd.f32 1.0, %v873_v36  ;;  %v576_v41 = vpop.permute.xlu2 %575  ;;  %v463_v42 = vmul.f32 %v865_v16, %v462_v33  ;;  %v432_v43 = vsub.f32 1.0, %v431_v35  ;;  %vm1208_vm1 = vcmp.eq.f32.partialorder %v514_v52, 8.507059e+37 }
 0x142   : > { %880 = vrcp.f32 %v1159_v37  ;;  %v448_v46 = vmul.f32 %v867_v24, %v447_v38  ;;  %v499_v56 = vand.u32 2147483647, %v1159_v37  ;;  %v501_v62 = vand.u32 2147483648, %v1159_v37 }
 0x143   : > { %v875_v47 = vpop.eup %874  ;;  %882 = vrcp.f32 %v1165_v40  ;;  %v464_v49 = vadd.f32 %v865_v16, %v463_v42  ;;  %v433_v51 = vmul.f32 %v869_v28, %v432_v43  ;;  %v604_v48 = vmul.f32 %v576_v41, %v978_v12 }
 0x144   : > { %v1170_v53 = vpop.eup %876  ;;  %v1172_v54 = vadd.f32 1.0, %v875_v47  ;;  %v449_v55 = vadd.f32 %v867_v24, %v448_v46  ;;  %v605_v9 = vmul.f32 %v576_v41, %v980_v13  ;;  %vm495_vm14 = vweird.f32 %v1159_v37 }
 0x145   : > { %v879_v59 = vpop.eup %878  ;;  %v468_v60 = vsel %vm467_vm10, %v865_v16, %v464_v49  ;;  %v434_v61 = vadd.f32 %v869_v28, %v433_v51  ;;  %v506_v63 = vmul.f32 %v1170_v53, %v1141_v17  ;;  %vm511_vm15 = vweird.f32 %v1170_v53 }
 0x146   : > { %884 = vrcp.f32 %v1172_v54  ;;  %v1187_v45 = vadd.f32 1.0, %v879_v59  ;;  %v453_v0 = vsel %vm452_vm12, %v867_v24, %v449_v55  ;;  %v473_v8 = vsel %vm1146_vm3, %v472_v34, %v468_v60  ;;  %vm512_vm3 = vmor %vm510_vm11, %vm511_vm15 }
 0x147   : > { %v458_v16 = vsel %vm1154_vm5, %v457_v31, %v453_v0  ;;  %690 = vperm.xlu2 %854, %v473_v8   ;;  %v438_v18 = vsel %vm437_vm13, %v869_v28, %v434_v61  ;;  %v507_v26 = vsub.f32 1.0, %v506_v63  ;;  %vm1204_vm0 = vcmp.eq.f32.partialorder %v499_v56, 8.507059e+37 }
 0x148   : > { %v881_v23 = vpop.eup %880  ;;  %685 = vperm.xlu0 %855, %v458_v16   ;;  %v443_v24 = vsel %vm1161_vm7, %v442_v44, %v438_v18  ;;  %v581_v25 = vpop.permute.xlu1 %580  ;;  %886 = vrcp.f32 %v1187_v45  ;;  %v502_v30 = vor.u32 1.1754944e-38, %v501_v62  ;;  %v517_v39 = vor.u32 1.1754944e-38, %v516_v58 }
 0x149   : > { %v883_v50 = vpop.eup %882  ;;  %680 = vperm.xlu1 %853, %v443_v24   ;;  %v586_v27 = vpop.permute.xlu2 %585  ;;  %v491_v29 = vmul.f32 %v881_v23, %v1159_v37  ;;  %v606_v32 = vmul.f32 %v581_v25, %v966_v6  ;;  %v607_v33 = vmul.f32 %v581_v25, %v968_v7  ;;  %vm496_vm2 = vweird.f32 %v881_v23 }
 0x14a   : > { %v508_v34 = vmul.f32 %v1170_v53, %v507_v26  ;;  %v608_v35 = vmul.f32 %v586_v27, %v982_v14  ;;  %v476_v41 = vmul.f32 %v883_v50, %v1165_v40  ;;  %v484_v47 = vand.u32 2147483647, %v1165_v40  ;;  %vm497_vm5 = vmor %vm495_vm14, %vm496_vm2 }
 0x14b   : > { %v571_v36 = vpop.permute.xlu0 %570  ;;  %v492_v38 = vsub.f32 1.0, %v491_v29  ;;  %v486_v52 = vand.u32 2147483648, %v1165_v40  ;;  %v609_v56 = vmul.f32 %v586_v27, %v984_v15  ;;  %vm481_vm4 = vweird.f32 %v883_v50 }
 0x14c   : > { %v1217_v42 = vpop.eup %884  ;;  %v602_v43 = vmul.f32 %v571_v36, %v960_v3  ;;  %v603_v44 = vmul.f32 %v571_v36, %v964_v5  ;;  %v509_v46 = vadd.f32 %v1170_v53, %v508_v34  ;;  %v477_v51 = vsub.f32 1.0, %v476_v41 }
 0x14d   : > { %v493_v49 = vmul.f32 %v881_v23, %v492_v38  ;;  %v536_v55 = vmul.f32 %v1217_v42, %v1172_v54  ;;  %vm480_vm6 = vweird.f32 %v1165_v40  ;;  %vm485_vm7 = vcmp.eq.f32.partialorder %v484_v47, 8.507059e+37 }
 0x14e   : > { %v615_v58 = vadd.f32 %v1132_v57, %v602_v43  ;;  %v628_v59 = vadd.f32 %v1137_v4, %v603_v44  ;;  %v513_v60 = vsel %vm512_vm3, %v1170_v53, %v509_v46  ;;  %v1234_v61 = vpop.eup %886  ;;  %v478_v63 = vmul.f32 %v883_v50, %v477_v51  ;;  %vm482_vm8 = vmor %vm480_vm6, %vm481_vm4 }
 0x14f   : > { %v494_v62 = vadd.f32 %v881_v23, %v493_v49  ;;  %v518_v17 = vsel %vm1208_vm1, %v517_v39, %v513_v60  ;;  %v537_v4 = vsub.f32 1.0, %v536_v55  ;;  %v487_v18 = vor.u32 1.1754944e-38, %v486_v52 }
 0x150   : > { %v616_v0 = vadd.f32 %v615_v58, %v604_v48  ;;  %v629_v8 = vadd.f32 %v628_v59, %v605_v9  ;;  %705 = vperm.xlu2 %854, %v518_v17   ;;  %v591_v57 = vpop.permute.xlu1 %590  ;;  %v479_v16 = vadd.f32 %v883_v50, %v478_v63  ;;  %vm541_vm9 = vweird.f32 %v1217_v42 }
 0x151   : > { %v498_v53 = vsel %vm497_vm5, %v881_v23, %v494_v62  ;;  %v610_v48 = vmul.f32 %v591_v57, %v992_v19  ;;  %v611_v26 = vmul.f32 %v591_v57, %v994_v20  ;;  %v596_v27 = vpop.permute.xlu2 %595  ;;  %v538_v40 = vmul.f32 %v1217_v42, %v537_v4 }
 0x152   : > { %v503_v24 = vsel %vm1204_vm0, %v502_v30, %v498_v53  ;;  %v617_v9 = vadd.f32 %v616_v0, %v606_v32  ;;  %v630_v25 = vadd.f32 %v629_v8, %v607_v33  ;;  %v483_v37 = vsel %vm482_vm8, %v883_v50, %v479_v16 }
 0x153   : > { %700 = vperm.xlu0 %855, %v503_v24   ;;  %v488_v23 = vsel %vm485_vm7, %v487_v18, %v483_v37  ;;  %v544_v28 = vand.u32 2147483647, %v1172_v54  ;;  %v539_v30 = vadd.f32 %v1217_v42, %v538_v40  ;;  %vm540_vm10 = vweird.f32 %v1172_v54 }
 0x154   : > { %v618_v29 = vadd.f32 %v617_v9, %v608_v35  ;;  %v631_v31 = vadd.f32 %v630_v25, %v609_v56  ;;  %695 = vperm.xlu1 %853, %v488_v23   ;;  %v546_v32 = vand.u32 2147483648, %v1172_v54  ;;  %v521_v50 = vmul.f32 %v1234_v61, %v1187_v45  ;;  %vm542_vm11 = vmor %vm540_vm10, %vm541_vm9 }
 0x155   : > { %v612_v36 = vmul.f32 %v596_v27, %v996_v21  ;;  %v613_v38 = vmul.f32 %v596_v27, %v998_v22  ;;  %v543_v35 = vsel %vm542_vm11, %v1217_v42, %v539_v30  ;;  %vm545_vm12 = vcmp.eq.f32.partialorder %v544_v28, 8.507059e+37 }
 0x156   : > { %v619_v33 = vadd.f32 %v618_v29, %v610_v48  ;;  %v632_v34 = vadd.f32 %v631_v31, %v611_v26  ;;  %v547_v39 = vor.u32 1.1754944e-38, %v546_v32  ;;  %v522_v41 = vsub.f32 1.0, %v521_v50 }
 0x157   : > { %v531_v46 = vand.u32 2147483648, %v1187_v45  ;;  %vm526_vm13 = vweird.f32 %v1234_v61  ;;  %v529_v49 = vand.u32 2147483647, %v1187_v45  ;;  %vm525_vm14 = vweird.f32 %v1187_v45 }
 0x158   : > { %v620_v43 = vadd.f32 %v619_v33, %v612_v36  ;;  %v633_v44 = vadd.f32 %v632_v34, %v613_v38  ;;  %v548_v54 = vsel %vm545_vm12, %v547_v39, %v543_v35  ;;  %v523_v47 = vmul.f32 %v1234_v61, %v522_v41  ;;  %vm527_vm15 = vmor %vm525_vm14, %vm526_vm13 }
 0x159   : > { %v532_v55 = vor.u32 1.1754944e-38, %v531_v46  ;;  %vm530_vm0 = vcmp.eq.f32.partialorder %v529_v49, 8.507059e+37 }
 0x15a   : > { %v621_v51 = vrot.slane %v620_v43, 4  ;;  %v524_v52 = vadd.f32 %v1234_v61, %v523_v47  ;;  %v634_v42 = vrot.slane %v633_v44, 4 }
 0x15b   : > { %715 = vperm.xlu0 %855, %v548_v54  }
 0x15c   : > { %v528_v56 = vsel %vm527_vm15, %v1234_v61, %v524_v52  ;;  %v622_v59 = vadd.f32 %v621_v51, %v620_v43  ;;  %v635_v60 = vadd.f32 %v634_v42, %v633_v44 }
 0x15d   : > { %v533_v58 = vsel %vm530_vm0, %v532_v55, %v528_v56 }
 0x15e   : > { %710 = vperm.xlu1 %853, %v533_v58   ;;  %v623_v62 = vrot.slane %v622_v59, 2  ;;  %v636_v17 = vrot.slane %v635_v60, 2 }
 0x160   : > { %v624_v63 = vadd.f32 %v623_v62, %v622_v59  ;;  %v637_v0 = vadd.f32 %v636_v17, %v635_v60 }
 0x162   : > { %v625_v8 = vrot.slane %v624_v63, 1  ;;  %v638_v57 = vrot.slane %v637_v0, 1 }
 0x164   : > { %v626_v4 = vadd.f32 %v625_v8, %v624_v63  ;;  %v639_v53 = vadd.f32 %v638_v57, %v637_v0 }
 0x166   : > { %v838_v16 = vmul.f32 -1.442695, %v626_v4  ;;  %v839_v45 = vmul.f32 -1.442695, %v639_v53 }
 0x168   : > { %888 = vpow2.f32 %v838_v16 }
 0x169   : > { %890 = vpow2.f32 %v839_v45 }
 0x16e   : > { %v889_v18 = vpop.eup %888 }
 0x16f   : > { %v891_v24 = vpop.eup %890  ;;  %v646_v61 = vadd.f32 1.0, %v889_v18 }
 0x170   : > { %v647_v48 = vadd.f32 1.0, %v891_v24 }
 0x171   : > { %892 = vrcp.f32 %v646_v61  ;;  %vm653_vm3 = vweird.f32 %v646_v61  ;;  %v659_v30 = vand.u32 2147483648, %v646_v61  ;;  %v657_v50 = vand.u32 2147483647, %v646_v61 }
 0x172   : > { %894 = vrcp.f32 %v647_v48  ;;  %v674_v32 = vand.u32 2147483648, %v647_v48  ;;  %vm668_vm5 = vweird.f32 %v647_v48  ;;  %v672_v33 = vand.u32 2147483647, %v647_v48 }
 0x173   : > { %v660_v38 = vor.u32 1.1754944e-38, %v659_v30  ;;  %vm658_vm7 = vcmp.eq.f32.partialorder %v657_v50, 8.507059e+37 }
 0x174   : > { %v675_v35 = vor.u32 1.1754944e-38, %v674_v32  ;;  %vm673_vm8 = vcmp.eq.f32.partialorder %v672_v33, 8.507059e+37 }
 0x177   : > { %v893_v9 = vpop.eup %892 }
 0x178   : > { %v895_v25 = vpop.eup %894  ;;  %v649_v37 = vmul.f32 %v893_v9, %v646_v61  ;;  %vm654_vm1 = vweird.f32 %v893_v9 }
 0x179   : > { %v664_v26 = vmul.f32 %v895_v25, %v647_v48  ;;  %vm669_vm2 = vweird.f32 %v895_v25  ;;  %vm655_vm4 = vmor %vm653_vm3, %vm654_vm1 }
 0x17a   : > { %v650_v27 = vsub.f32 1.0, %v649_v37  ;;  %vm670_vm6 = vmor %vm668_vm5, %vm669_vm2 }
 0x17b   : > { %v665_v40 = vsub.f32 1.0, %v664_v26 }
 0x17c   : > { %v651_v23 = vmul.f32 %v893_v9, %v650_v27 }
 0x17d   : > { %v666_v29 = vmul.f32 %v895_v25, %v665_v40 }
 0x17e   : > { %v652_v31 = vadd.f32 %v893_v9, %v651_v23 }
 0x17f   : > { %v667_v28 = vadd.f32 %v895_v25, %v666_v29 }
 0x180   : > { %v656_v34 = vsel %vm655_vm4, %v893_v9, %v652_v31 }
 0x181   : > { %v671_v36 = vsel %vm670_vm6, %v895_v25, %v667_v28  ;;  %v661_v39 = vsel %vm658_vm7, %v660_v38, %v656_v34 }
 0x182   : > { %v676_v41 = vsel %vm673_vm8, %v675_v35, %v671_v36 }
 0x1a1   : > { %v691_v43 = vpop.permute.xlu2 %690 }
 0x1a2   : > { %v722_v44 = vadd.f32 %v691_v43, %v661_v39  ;;  %v723_v46 = vadd.f32 %v691_v43, %v676_v41 }
 0x1a4   : > { %v738_v54 = vmul.f32 %v722_v44, %v960_v3  ;;  %v739_v47 = vmul.f32 %v723_v46, %v964_v5 }
 0x1a6   : > { %754 = vst [vmem:[%s1269_s8 + $0x20] sm:$0xff] %v738_v54 }
 0x1a7   : > { %755 = vst [vmem:[%s1269_s8 + $0x28] sm:$0xff] %v739_v47 }
 0x1aa   : > { %v706_v49 = vpop.permute.xlu2 %705 }
 0x1ab   : > { %v728_v51 = vadd.f32 %v706_v49, %v661_v39  ;;  %v729_v52 = vadd.f32 %v706_v49, %v676_v41 }
 0x1ad   : > { %v744_v42 = vmul.f32 %v728_v51, %v982_v14  ;;  %v745_v55 = vmul.f32 %v729_v52, %v984_v15 }
 0x1af   : > { %760 = vst [vmem:[%s1269_s8 + $0x50] sm:$0xff] %v744_v42 }
 0x1b0   : > { %761 = vst [vmem:[%s1269_s8 + $0x58] sm:$0xff] %v745_v55 }
 0x1ba   : > { %v686_v56 = vpop.permute.xlu0 %685 }
 0x1bb   : > { %v720_v58 = vadd.f32 %v686_v56, %v661_v39  ;;  %v721_v3 = vadd.f32 %v686_v56, %v676_v41  ;;  %v681_v59 = vpop.permute.xlu1 %680 }
 0x1bc   : > { %v718_v5 = vadd.f32 %v681_v59, %v661_v39  ;;  %v719_v60 = vadd.f32 %v681_v59, %v676_v41 }
 0x1bd   : > { %v736_v62 = vmul.f32 %v720_v58, %v974_v10  ;;  %v737_v17 = vmul.f32 %v721_v3, %v976_v11 }
 0x1be   : > { %v734_v63 = vmul.f32 %v718_v5, %v956_v1  ;;  %v735_v14 = vmul.f32 %v719_v60, %v958_v2 }
 0x1bf   : > { %752 = vst [vmem:[%s1269_s8 + $0x10] sm:$0xff] %v736_v62 }
 0x1c0   : > { %753 = vst [vmem:[%s1269_s8 + $0x18] sm:$0xff] %v737_v17 }
 0x1c1   : > { %750 = vst [vmem:[%s1269_s8] sm:$0xff] %v734_v63 }
 0x1c2   : > { %751 = vst [vmem:[%s1269_s8 + $0x8] sm:$0xff] %v735_v14 }
 0x1c5   : > { %v701_v15 = vpop.permute.xlu0 %700 }
 0x1c6   : > { %v726_v0 = vadd.f32 %v701_v15, %v661_v39  ;;  %v727_v8 = vadd.f32 %v701_v15, %v676_v41  ;;  %v696_v57 = vpop.permute.xlu1 %695 }
 0x1c7   : > { %v724_v4 = vadd.f32 %v696_v57, %v661_v39  ;;  %v725_v1 = vadd.f32 %v696_v57, %v676_v41 }
 0x1c8   : > { %v742_v10 = vmul.f32 %v726_v0, %v966_v6  ;;  %v743_v11 = vmul.f32 %v727_v8, %v968_v7 }
 0x1c9   : > { %v740_v2 = vmul.f32 %v724_v4, %v978_v12  ;;  %v741_v53 = vmul.f32 %v725_v1, %v980_v13 }
 0x1ca   : > { %758 = vst [vmem:[%s1269_s8 + $0x40] sm:$0xff] %v742_v10 }
 0x1cb   : > { %759 = vst [vmem:[%s1269_s8 + $0x48] sm:$0xff] %v743_v11 }
 0x1cc   : > { %756 = vst [vmem:[%s1269_s8 + $0x30] sm:$0xff] %v740_v2 }
 0x1cd   : > { %757 = vst [vmem:[%s1269_s8 + $0x38] sm:$0xff] %v741_v53  ;;  %v716_v16 = vpop.permute.xlu0 %715 }
 0x1ce   : > { %v732_v45 = vadd.f32 %v716_v16, %v661_v39  ;;  %v733_v18 = vadd.f32 %v716_v16, %v676_v41 }
 0x1d0   : > { %v748_v6 = vmul.f32 %v732_v45, %v996_v21  ;;  %v749_v7 = vmul.f32 %v733_v18, %v998_v22  ;;  %v711_v24 = vpop.permute.xlu1 %710 }
 0x1d1   : > { %v730_v61 = vadd.f32 %v711_v24, %v661_v39  ;;  %v731_v48 = vadd.f32 %v711_v24, %v676_v41 }
 0x1d2   : > { %764 = vst [vmem:[%s1269_s8 + $0x70] sm:$0xff] %v748_v6 }
 0x1d3   : > { %765 = vst [vmem:[%s1269_s8 + $0x78] sm:$0xff] %v749_v7  ;;  %v746_v12 = vmul.f32 %v730_v61, %v992_v19  ;;  %v747_v13 = vmul.f32 %v731_v48, %v994_v20 }
 0x1d5   : > { %762 = vst [vmem:[%s1269_s8 + $0x60] sm:$0xff] %v746_v12 }
 0x1d6   : > { %763 = vst [vmem:[%s1269_s8 + $0x68] sm:$0xff] %v747_v13 }
 0x1d7 PF: > { %s16_s21 = sadd.s32 1, %s902_s21  }
 0x1d8   : > { %p13_p4 = scmp.ge.s32.totalorder %s16_s21, 4  }
 0x1da   :  { %15 = sbr.rel (!%p13_p4) target bundleno = 1 (0x1), region = 74 }

</bundles_post_ra>
